<compile_context>
chip_gen: v7x
topology: tpu7x:2x2x1
jax: 0.10.0
libtpu: 0.0.40
codegen_flags: <defaults>
</compile_context>

<pallas_src>
import math

import jax
import jax.numpy as jnp
from jax import lax
from jax.experimental import pallas as pl
from jax.experimental.pallas import tpu as pltpu

# ---- static architecture constants (from the nn.Module __init__) -----------
H = W = 8                      # feature_size, forced by Linear(64, ...) after the convs
ENTITY_SCALE = 2               # one-hot classes of obs.entity_map
CELL_SCALE = 2                 # one-hot classes of obs.cell_map  (2 + 2 = 4 = preproc in_ch)
C_PRE_IN, C_PRE_OUT = 4, 2     # preproc: Conv2d(4, 2, 1)
C1_IN, C1_OUT, K1 = 3, 8, 3    # conv[0]: Conv2d(3, 8, 3)
C2_IN, C2_OUT, K2 = 8, 16, 5   # conv[2]: Conv2d(8, 16, 5)
H1 = H - K1 + 1                # 6
H2 = H1 - K2 + 1               # 2
FLAT = C2_OUT * H2 * H2        # 64
HID = 32
N_ACT = 6

C_RAW = ENTITY_SCALE + CELL_SCALE + 1   # 5 raw channels: one-hot(4) + treasure(1)
IN_REAL = C_RAW * H * W                 # 320
L1_REAL = C1_OUT * H1 * H1              # 288

# Padded (lane-aligned) layer widths.  A dedicated "bias lane" right after the
# real features carries a constant 1.0 through every layer (relu(1)=1), so all
# biases fold into the matmuls.
D_IN, B_IN = 384, IN_REAL               # input : 320 real | 1.0 @ 320 | zero pad
D_L1, B_L1 = 384, L1_REAL               # conv1 : 288 real | 1.0 @ 288 | zero pad
D_L2, B_L2 = 128, FLAT                  # conv2 :  64 real | 1.0 @ 64  | zero pad
D_L3, B_L3 = 128, HID                   # flat  :  32 real | 1.0 @ 32  | zero pad
D_OUT = 128                             # heads : 6 policy + 1 value  | zero pad


# ---------------------------- Pallas kernel ---------------------------------
def _ti_mlp_kernel(x_ref, w1_ref, wrest_ref, out_ref):
    # NOTE: matmuls use the TPU MXU's default f32 path (same behavior as the
    # previous, validated version); parity with a HIGHEST-precision XLA
    # reference is well inside the 2e-3 test tolerance.
    a = jnp.dot(x_ref[...], w1_ref[...], preferred_element_type=jnp.float32)
    a = jnp.maximum(a, 0.0)                    # (1, 384): preproc∘conv1 + ReLU
    a = jnp.dot(a, wrest_ref[0:D_L1, :], preferred_element_type=jnp.float32)
    a = jnp.maximum(a, 0.0)                    # (1, 128): conv2 + ReLU
    a = jnp.dot(a, wrest_ref[D_L1:D_L1 + D_L2, :],
                preferred_element_type=jnp.float32)
    a = jnp.maximum(a, 0.0)                    # (1, 128): flat Linear(64,32) + ReLU
    out_ref[...] = jnp.dot(a, wrest_ref[D_L1 + D_L2:D_L1 + D_L2 + D_L3, :],
                           preferred_element_type=jnp.float32)  # fused policy|value


# ------------------------- weight / input repacking --------------------------
def _pack_weights(params):
    """Exact linear-algebra repack of the PyTorch-layout weights into the two
    lane-dense matmul operands consumed by the kernel."""
    f32 = jnp.float32

    # ---- fold preproc Conv2d(4,2,1) into conv1 Conv2d(3,8,3) ----------------
    wpre = params["wpre"].reshape(C_PRE_OUT, C_PRE_IN).astype(f32)   # (2, 4)
    bpre = params["bpre"].astype(f32)                                # (2,)
    w1 = params["w1"].astype(f32)                                    # (8, 3, 3, 3)
    b1 = params["b1"].astype(f32)                                    # (8,)
    w1_cat = w1[:, :C_PRE_OUT]                                       # acts on preproc out
    w1c = jnp.concatenate(
        [jnp.einsum("ocyx,cj->ojyx", w1_cat, wpre), w1[:, C_PRE_OUT:]], axis=1)  # (8,5,3,3)
    b1c = b1 + jnp.einsum("ocyx,c->o", w1_cat, bpre)                 # (8,)

    # ---- conv1 (3x3 valid) as a Toeplitz matmul: (320+1) -> (288+1) ---------
    OC, Y, X, J, KY, KX = jnp.meshgrid(
        jnp.arange(C1_OUT), jnp.arange(H1), jnp.arange(H1),
        jnp.arange(C_RAW), jnp.arange(K1), jnp.arange(K1), indexing="ij")
    rows = (J * (H * W) + (Y + KY) * W + (X + KX)).ravel()
    cols = (OC * (H1 * H1) + Y * H1 + X).ravel()
    w1a = jnp.zeros((D_IN, D_L1), f32).at[rows, cols].set(w1c[OC, J, KY, KX].ravel())
    w1a = w1a.at[B_IN, :L1_REAL].set(jnp.repeat(b1c, H1 * H1))
    w1a = w1a.at[B_IN, B_L1].set(1.0)

    # ---- conv2 (5x5 valid) as a Toeplitz matmul: (288+1) -> (64+1) ----------
    w2 = params["w2"].astype(f32)                                    # (16, 8, 5, 5)
    b2 = params["b2"].astype(f32)                                    # (16,)
    OC, Y, X, IC, KY, KX = jnp.meshgrid(
        jnp.arange(C2_OUT), jnp.arange(H2), jnp.arange(H2),
        jnp.arange(C2_IN), jnp.arange(K2), jnp.arange(K2), indexing="ij")
    rows = (IC * (H1 * H1) + (Y + KY) * H1 + (X + KX)).ravel()
    cols = (OC * (H2 * H2) + Y * H2 + X).ravel()     # == torch flatten order (oc, y, x)
    w2a = jnp.zeros((D_L1, D_L2), f32).at[rows, cols].set(w2[OC, IC, KY, KX].ravel())
    w2a = w2a.at[B_L1, :FLAT].set(jnp.repeat(b2, H2 * H2))
    w2a = w2a.at[B_L1, B_L2].set(1.0)

    # ---- flat Linear(64, 32): (64+1) -> (32+1) ------------------------------
    wfa = jnp.zeros((D_L2, D_L3), f32)
    wfa = wfa.at[:FLAT, :HID].set(params["wf"].T.astype(f32))
    wfa = wfa.at[B_L2, :HID].set(params["bf"].astype(f32))
    wfa = wfa.at[B_L2, B_L3].set(1.0)

    # ---- fused heads: policy Linear(32,6) | value Linear(32,1) --------------
    wha = jnp.zeros((D_L3, D_OUT), f32)
    wha = wha.at[:HID, :N_ACT].set(params["wp"].T.astype(f32))
    wha = wha.at[:HID, N_ACT].set(params["wv"][0].astype(f32))
    wha = wha.at[B_L3, :N_ACT].set(params["bp"].astype(f32))
    wha = wha.at[B_L3, N_ACT].set(params["bv"][0].astype(f32))

    # single packed slab for everything after layer 1: one DMA instead of many
    wrest = jnp.concatenate([w2a, wfa, wha], axis=0)                 # (640, 128)
    return w1a, wrest


def _pack_obs(entity_map, cell_map, treasure_map):
    # glue: one-hot encode the categorical maps (torch scatter_ equivalent),
    # flatten to the (320 real | 1.0 bias lane | zero pad) input row vector.
    onehot = jnp.concatenate(
        [jax.nn.one_hot(entity_map, ENTITY_SCALE, axis=0, dtype=jnp.float32),
         jax.nn.one_hot(cell_map, CELL_SCALE, axis=0, dtype=jnp.float32)],
        axis=0)                                                      # (4, 8, 8)
    x = jnp.concatenate(
        [onehot.reshape(-1), treasure_map.astype(jnp.float32).reshape(-1),
         jnp.ones((1,), jnp.float32),
         jnp.zeros((D_IN - IN_REAL - 1,), jnp.float32)])
    return x.reshape(1, D_IN)


# ------------------------------- wrapper -------------------------------------
@jax.jit
def ti_model_forward(params, entity_map, cell_map, treasure_map):
    x = _pack_obs(entity_map, cell_map, treasure_map)
    w1a, wrest = _pack_weights(params)   # weight-only; cacheable per param set

    vmem = pl.BlockSpec(memory_space=pltpu.MemorySpace.VMEM)
    # TODO(synk): if multiple envs are evaluated per A2C step, stack them on a
    # leading grid axis with dimension_semantics=("parallel",) to grow the MXU
    # M dimension and use both v7x TensorCores; the module itself is batch=1.
    out = pl.pallas_call(
        _ti_mlp_kernel,
        out_shape=jax.ShapeDtypeStruct((1, D_OUT), jnp.float32),
        in_specs=[vmem, vmem, vmem],
        out_specs=vmem,
    )(x, w1a, wrest)

    policy = out[0, :N_ACT]
    value = out[0, N_ACT:N_ACT + 1]
    return policy, value


# --------------------------- parameter init ----------------------------------
def init_params(key):
    ks = jax.random.split(key, 12)

    def u(k, shape, fan_in):
        b = 1.0 / math.sqrt(fan_in)
        return jax.random.uniform(k, shape, jnp.float32, -b, b)

    return dict(
        wpre=u(ks[0], (C_PRE_OUT, C_PRE_IN, 1, 1), C_PRE_IN),
        bpre=u(ks[1], (C_PRE_OUT,), C_PRE_IN),
        w1=u(ks[2], (C1_OUT, C1_IN, K1, K1), C1_IN * K1 * K1),
        b1=u(ks[3], (C1_OUT,), C1_IN * K1 * K1),
        w2=u(ks[4], (C2_OUT, C2_IN, K2, K2), C2_IN * K2 * K2),
        b2=u(ks[5], (C2_OUT,), C2_IN * K2 * K2),
        wf=u(ks[6], (HID, FLAT), FLAT),
        bf=u(ks[7], (HID,), FLAT),
        wp=u(ks[8], (N_ACT, HID), HID),
        bp=u(ks[9], (N_ACT,), HID),
        wv=u(ks[10], (1, HID), HID),
        bv=u(ks[11], (1,), HID),
    )


# ---------------------- pure-JAX reference (for checking) --------------------
def reference_forward(p, entity_map, cell_map, treasure_map):
    dn = ("NCHW", "OIHW", "NCHW")
    prec = lax.Precision.HIGHEST
    oh = jnp.concatenate(
        [jax.nn.one_hot(entity_map, ENTITY_SCALE, axis=0, dtype=jnp.float32),
         jax.nn.one_hot(cell_map, CELL_SCALE, axis=0, dtype=jnp.float32)],
        axis=0)[None]                                                   # (1,4,8,8)
    pre = lax.conv_general_dilated(oh, p["wpre"], (1, 1), "VALID",
                                   dimension_numbers=dn, precision=prec)
    pre = pre + p["bpre"][None, :, None, None]
    obs = jnp.concatenate([pre, treasure_map[None, None].astype(jnp.float32)], axis=1)
    h1 = lax.conv_general_dilated(obs, p["w1"], (1, 1), "VALID",
                                  dimension_numbers=dn, precision=prec)
    h1 = jax.nn.relu(h1 + p["b1"][None, :, None, None])
    h2 = lax.conv_general_dilated(h1, p["w2"], (1, 1), "VALID",
                                  dimension_numbers=dn, precision=prec)
    h2 = jax.nn.relu(h2 + p["b2"][None, :, None, None])
    flat = h2.reshape(-1)                                               # (64,), torch flatten order
    h = jax.nn.relu(jnp.dot(p["wf"], flat, precision=prec) + p["bf"])
    policy = jnp.dot(p["wp"], h, precision=prec) + p["bp"]
    value = jnp.dot(p["wv"], h, precision=prec) + p["bv"]
    return policy, value


if __name__ == "__main__":
    key = jax.random.PRNGKey(0)
    kp, k1, k2, k3 = jax.random.split(key, 4)
    params = init_params(kp)

    entity_map = jax.random.randint(k1, (H, W), 0, ENTITY_SCALE)
    cell_map = jax.random.randint(k2, (H, W), 0, CELL_SCALE)
    treasure_map = jax.random.normal(k3, (H, W), jnp.float32)

    policy, value = ti_model_forward(params, entity_map, cell_map, treasure_map)
    jax.block_until_ready((policy, value))

    ref_policy, ref_value = reference_forward(params, entity_map, cell_map, treasure_map)
    assert policy.shape == (N_ACT,) and value.shape == (1,)
    # MXU default f32 path vs HIGHEST-precision XLA reference: small numeric
    # differences expected; 2e-3 comfortably covers them.
    assert jnp.allclose(policy, ref_policy, atol=2e-3, rtol=2e-3), (policy, ref_policy)
    assert jnp.allclose(value, ref_value, atol=2e-3, rtol=2e-3), (value, ref_value)
    print("KERNEL_OK")
</pallas_src>

<mosaic_0001>
module attributes {stable_mosaic.version = 11 : i64} {
  func.func @_ti_mlp_kernel(%arg0: memref<1x384xf32, #tpu.memory_space<vmem>>, %arg1: memref<384x384xf32, #tpu.memory_space<vmem>>, %arg2: memref<640x128xf32, #tpu.memory_space<vmem>>, %arg3: memref<1x128xf32, #tpu.memory_space<vmem>>) attributes {dimension_semantics = [], scalar_prefetch = 0 : i64, scratch_operands = 0 : i64, tpu.core_type = #tpu.core_type<tc>} {
    %c0 = arith.constant 0 : index
    %c0_0 = arith.constant 0 : index
    %0 = vector.load %arg0[%c0, %c0_0] : memref<1x384xf32, #tpu.memory_space<vmem>>, vector<1x384xf32>
    %c0_1 = arith.constant 0 : index
    %c0_2 = arith.constant 0 : index
    %1 = vector.load %arg1[%c0_1, %c0_2] : memref<384x384xf32, #tpu.memory_space<vmem>>, vector<384x384xf32>
    %cst = arith.constant dense<0.000000e+00> : vector<1x384xf32>
    %2 = tpu.matmul %0, %1, %cst {dimension_numbers = #tpu.dot_dimension_numbers<[1], [0], [0], [1], [0, 0, 1, 1], [], []>} : vector<1x384xf32>, vector<384x384xf32>, vector<1x384xf32> -> vector<1x384xf32>
    %cst_3 = arith.constant 0.000000e+00 : f32
    %3 = vector.broadcast %cst_3 : f32 to vector<1x384xf32>
    %4 = arith.maximumf %2, %3 : vector<1x384xf32>
    %c0_4 = arith.constant 0 : index
    %c0_5 = arith.constant 0 : index
    %5 = vector.load %arg2[%c0_4, %c0_5] : memref<640x128xf32, #tpu.memory_space<vmem>>, vector<384x128xf32>
    %cst_6 = arith.constant dense<0.000000e+00> : vector<1x128xf32>
    %6 = tpu.matmul %4, %5, %cst_6 {dimension_numbers = #tpu.dot_dimension_numbers<[1], [0], [0], [1], [0, 0, 1, 1], [], []>} : vector<1x384xf32>, vector<384x128xf32>, vector<1x128xf32> -> vector<1x128xf32>
    %cst_7 = arith.constant 0.000000e+00 : f32
    %7 = vector.broadcast %cst_7 : f32 to vector<1x128xf32>
    %8 = arith.maximumf %6, %7 : vector<1x128xf32>
    %c384 = arith.constant 384 : index
    %c0_8 = arith.constant 0 : index
    %9 = vector.load %arg2[%c384, %c0_8] : memref<640x128xf32, #tpu.memory_space<vmem>>, vector<128x128xf32>
    %cst_9 = arith.constant dense<0.000000e+00> : vector<1x128xf32>
    %10 = tpu.matmul %8, %9, %cst_9 {dimension_numbers = #tpu.dot_dimension_numbers<[1], [0], [0], [1], [0, 0, 1, 1], [], []>} : vector<1x128xf32>, vector<128x128xf32>, vector<1x128xf32> -> vector<1x128xf32>
    %cst_10 = arith.constant 0.000000e+00 : f32
    %11 = vector.broadcast %cst_10 : f32 to vector<1x128xf32>
    %12 = arith.maximumf %10, %11 : vector<1x128xf32>
    %c512 = arith.constant 512 : index
    %c0_11 = arith.constant 0 : index
    %13 = vector.load %arg2[%c512, %c0_11] : memref<640x128xf32, #tpu.memory_space<vmem>>, vector<128x128xf32>
    %cst_12 = arith.constant dense<0.000000e+00> : vector<1x128xf32>
    %14 = tpu.matmul %12, %13, %cst_12 {dimension_numbers = #tpu.dot_dimension_numbers<[1], [0], [0], [1], [0, 0, 1, 1], [], []>} : vector<1x128xf32>, vector<128x128xf32>, vector<1x128xf32> -> vector<1x128xf32>
    %c0_13 = arith.constant 0 : index
    %c0_14 = arith.constant 0 : index
    %15 = vector.load %arg3[%c0_13, %c0_14] : memref<1x128xf32, #tpu.memory_space<vmem>>, vector<1x128xf32>
    tpu.vector_store %arg3[%c0_13, %c0_14], %14 {strides = array<i32>} : memref<1x128xf32, #tpu.memory_space<vmem>>, vector<1x128xf32>,
    return
  }
}

</mosaic_0001>

<bundles_post_ra>
// kernel: ti_model_forward.1
= control target key start
LH: loop header
LB: loop body
LE: loop exit
PB: predicated region body
PF: predicated region fallthrough
CT: control target
= control target key end

     0   :  { %v160_v54 = vlaneseq  ;;  %vm1367_vm0 = vmmov 0   ;;  %s2126_s1 = inlined_call_operand.vmem [shape: f32[384,384], index: 1, kind: input, shape index: {}]   ;;  %s2127_s0 = inlined_call_operand.vmem [shape: f32[1,384], index: 0, kind: input, shape index: {}]   ;;  %s2128_s2 = inlined_call_operand.vmem [shape: f32[640,128], index: 2, kind: input, shape index: {}]   ;;  %s2129_s3 = inlined_call_operand.vmem [shape: f32[1,128], index: 3, kind: output, shape index: {}]  }
   0x1   :  { %v16_v0 = vld [vmem:[%s2126_s1 + $0x8] sm:$0xff]  ;;  %v19_v1 = vld [vmem:[%s2126_s1 + $0x20] sm:$0xff]  ;;  %v18_v4 = vld [vmem:[%s2126_s1 + $0x18] sm:$0xff] }
   0x2   :  { %v15_v2 = vld [vmem:[%s2126_s1] sm:$0xff]  ;;  %v1105_v3 = vpack.c.bf16 %v19_v1, %v16_v0  ;;  %v22_v5 = vld [vmem:[%s2126_s1 + $0x38] sm:$0xff]  ;;  %v25_v6 = vld [vmem:[%s2126_s1 + $0x50] sm:$0xff] }
   0x3   :  { %v1107_v7 = vpack.c.bf16 %v18_v4, %v15_v2  ;;  %v1109_v8 = vpack.c.bf16 %v25_v6, %v22_v5  ;;  %v21_v9 = vld [vmem:[%s2126_s1 + $0x30] sm:$0xff]  ;;  %v24_v10 = vld [vmem:[%s2126_s1 + $0x48] sm:$0xff]  ;;  %v31_v19 = vld [vmem:[%s2126_s1 + $0x80] sm:$0xff] }
   0x4   :  { %v65_v11 = vld [vmem:[%s2126_s1 + $0x190] sm:$0xff]  ;;  %1106 = vmatprep.subr.bf16.mxu0 %v1105_v3  ;;  %v68_v12 = vld [vmem:[%s2126_s1 + $0x1a8] sm:$0xff]  ;;  %v1111_v15 = vpack.c.bf16 %v24_v10, %v21_v9  ;;  %v27_v20 = vld [vmem:[%s2126_s1 + $0x60] sm:$0xff]  ;;  %v1527_v3 = vshrl.u32 %v160_v54, 7 }
   0x5   :  { %v17_v13 = vld [vmem:[%s2126_s1 + $0x10] sm:$0xff]  ;;  %v20_v14 = vld [vmem:[%s2126_s1 + $0x28] sm:$0xff]  ;;  %1108 = vmatpush1.bf16.msra.mxu0 %v1107_v7  ;;  %v1201_v16 = vpack.c.bf16 %v68_v12, %v65_v11  ;;  %v30_v22 = vld [vmem:[%s2126_s1 + $0x78] sm:$0xff] }
   0x6   :  { %v1203_v17 = vpack.c.bf16 %v20_v14, %v17_v13  ;;  %v28_v18 = vld [vmem:[%s2126_s1 + $0x68] sm:$0xff]  ;;  %1110 = vmatprep.subr.bf16.mxu0 %v1109_v8  ;;  %v71_v23 = vld [vmem:[%s2126_s1 + $0x1c0] sm:$0xff]  ;;  %v74_v24 = vld [vmem:[%s2126_s1 + $0x1d8] sm:$0xff]  ;;  %v1115_v31 = vpack.c.bf16 %v30_v22, %v27_v20 }
   0x7   :  { %v1113_v21 = vpack.c.bf16 %v31_v19, %v28_v18  ;;  %1202 = vmatprep.subr.bf16.mxu1 %v1201_v16  ;;  %v1205_v25 = vpack.c.bf16 %v74_v24, %v71_v23  ;;  %v23_v26 = vld [vmem:[%s2126_s1 + $0x40] sm:$0xff]  ;;  %v26_v27 = vld [vmem:[%s2126_s1 + $0x58] sm:$0xff]  ;;  %v37_v30 = vld [vmem:[%s2126_s1 + $0xb0] sm:$0xff]  ;;  %v166_v16 = vsub.s32 1, %v1527_v3 }
   0x8   :  { %v34_v28 = vld [vmem:[%s2126_s1 + $0x98] sm:$0xff]  ;;  %1204 = vmatpush3.bf16.msra.mxu1 %v1203_v17  ;;  %v1207_v29 = vpack.c.bf16 %v26_v27, %v23_v26  ;;  %v77_v32 = vld [vmem:[%s2126_s1 + $0x1f0] sm:$0xff]  ;;  %v80_v33 = vld [vmem:[%s2126_s1 + $0x208] sm:$0xff] }
   0x9   :  { %1112 = vmatpush1.bf16.msra.mxu0 %v1111_v15  ;;  %1206 = vmatprep.subr.bf16.mxu1 %v1205_v25  ;;  %v29_v34 = vld [vmem:[%s2126_s1 + $0x70] sm:$0xff]  ;;  %v1117_v35 = vpack.c.bf16 %v37_v30, %v34_v28  ;;  %v36_v37 = vld [vmem:[%s2126_s1 + $0xa8] sm:$0xff]  ;;  %v1209_v38 = vpack.c.bf16 %v80_v33, %v77_v32  ;;  %v43_v41 = vld [vmem:[%s2126_s1 + $0xe0] sm:$0xff] }
   0xa   :  { %1114 = vmatprep.subr.bf16.mxu0 %v1113_v21  ;;  %v33_v36 = vld [vmem:[%s2126_s1 + $0x90] sm:$0xff]  ;;  %v32_v39 = vld [vmem:[%s2126_s1 + $0x88] sm:$0xff]  ;;  %v83_v42 = vld [vmem:[%s2126_s1 + $0x220] sm:$0xff] }
   0xb   :  { %v40_v40 = vld [vmem:[%s2126_s1 + $0xc8] sm:$0xff]  ;;  %v1211_v43 = vpack.c.bf16 %v32_v39, %v29_v34  ;;  %v86_v44 = vld [vmem:[%s2126_s1 + $0x238] sm:$0xff]  ;;  %v1119_v45 = vpack.c.bf16 %v36_v37, %v33_v36  ;;  %v39_v46 = vld [vmem:[%s2126_s1 + $0xc0] sm:$0xff] }
   0xc   :  { %1208 = vmatpush3.bf16.msra.mxu1 %v1207_v29  ;;  %v1213_v47 = vpack.c.bf16 %v86_v44, %v83_v42  ;;  %v35_v48 = vld [vmem:[%s2126_s1 + $0xa0] sm:$0xff]  ;;  %v38_v49 = vld [vmem:[%s2126_s1 + $0xb8] sm:$0xff]  ;;  %v1121_v50 = vpack.c.bf16 %v43_v41, %v40_v40  ;;  %v89_v52 = vld [vmem:[%s2126_s1 + $0x250] sm:$0xff] }
   0xd   :  { %1116 = vmatpush1.bf16.msra.mxu0 %v1115_v31  ;;  %1210 = vmatprep.subr.bf16.mxu1 %v1209_v38  ;;  %v42_v51 = vld [vmem:[%s2126_s1 + $0xd8] sm:$0xff]  ;;  %v92_v53 = vld [vmem:[%s2126_s1 + $0x268] sm:$0xff]  ;;  %v49_v56 = vld [vmem:[%s2126_s1 + $0x110] sm:$0xff]  ;;  %v1215_v57 = vpack.c.bf16 %v38_v49, %v35_v48 }
   0xe   :  { %1118 = vmatprep.subr.bf16.mxu0 %v1117_v35  ;;  %v46_v55 = vld [vmem:[%s2126_s1 + $0xf8] sm:$0xff]  ;;  %v1123_v58 = vpack.c.bf16 %v42_v51, %v39_v46  ;;  %v45_v59 = vld [vmem:[%s2126_s1 + $0xf0] sm:$0xff]  ;;  %v1217_v60 = vpack.c.bf16 %v92_v53, %v89_v52  ;;  %v44_v62 = vld [vmem:[%s2126_s1 + $0xe8] sm:$0xff] }
   0xf   :  { %v41_v61 = vld [vmem:[%s2126_s1 + $0xd0] sm:$0xff]  ;;  %v1125_v63 = vpack.c.bf16 %v49_v56, %v46_v55  ;;  %v48_v0 = vld [vmem:[%s2126_s1 + $0x108] sm:$0xff]  ;;  %v95_v1 = vld [vmem:[%s2126_s1 + $0x280] sm:$0xff]  ;;  %v1366_v56 = vmov 0.0|0.0  }
  0x10   :  { %1212 = vmatpush3.bf16.msra.mxu1 %v1211_v43  ;;  %v98_v2 = vld [vmem:[%s2126_s1 + $0x298] sm:$0xff]  ;;  %v52_v4 = vld [vmem:[%s2126_s1 + $0x128] sm:$0xff]  ;;  %v55_v5 = vld [vmem:[%s2126_s1 + $0x140] sm:$0xff]  ;;  %v1219_v6 = vpack.c.bf16 %v44_v62, %v41_v61  ;;  %v1127_v7 = vpack.c.bf16 %v48_v0, %v45_v59  ;;  %v162_v43 = vsub.s32 0, %v1527_v3 }
  0x11   :  { %1120 = vmatpush1.bf16.msra.mxu0 %v1119_v45  ;;  %1214 = vmatprep.subr.bf16.mxu1 %v1213_v47  ;;  %v51_v8 = vld [vmem:[%s2126_s1 + $0x120] sm:$0xff]  ;;  %v1221_v9 = vpack.c.bf16 %v98_v2, %v95_v1  ;;  %v50_v11 = vld [vmem:[%s2126_s1 + $0x118] sm:$0xff]  ;;  %v1129_v12 = vpack.c.bf16 %v55_v5, %v52_v4  ;;  %v101_v14 = vld [vmem:[%s2126_s1 + $0x2b0] sm:$0xff]  ;;  %v1368_v1 = vmov 0.0  }
  0x12   :  { %1122 = vmatprep.subr.bf16.mxu0 %v1121_v50  ;;  %v47_v10 = vld [vmem:[%s2126_s1 + $0x100] sm:$0xff]  ;;  %v54_v13 = vld [vmem:[%s2126_s1 + $0x138] sm:$0xff]  ;;  %v104_v15 = vld [vmem:[%s2126_s1 + $0x2c8] sm:$0xff] }
  0x13   :  { %v58_v17 = vld [vmem:[%s2126_s1 + $0x158] sm:$0xff]  ;;  %v61_v18 = vld [vmem:[%s2126_s1 + $0x170] sm:$0xff]  ;;  %v1223_v19 = vpack.c.bf16 %v50_v11, %v47_v10  ;;  %v1131_v21 = vpack.c.bf16 %v54_v13, %v51_v8  ;;  %v1225_v22 = vpack.c.bf16 %v104_v15, %v101_v14  ;;  %v56_v24 = vld [vmem:[%s2126_s1 + $0x148] sm:$0xff] }
  0x14   :  { %1216 = vmatpush3.bf16.msra.mxu1 %v1215_v57  ;;  %v57_v20 = vld [vmem:[%s2126_s1 + $0x150] sm:$0xff]  ;;  %v1572_v25 = vld [vmem:[%s2127_s0] sm:$0x7]  ;;  %v1133_v26 = vpack.c.bf16 %v61_v18, %v58_v17  ;;  %v60_v27 = vld [vmem:[%s2126_s1 + $0x168] sm:$0xff] }
  0x15   :  { %1124 = vmatpush1.bf16.msra.mxu0 %v1123_v58  ;;  %1218 = vmatprep.subr.bf16.mxu1 %v1217_v60  ;;  %v53_v23 = vld [vmem:[%s2126_s1 + $0x130] sm:$0xff]  ;;  %v107_v28 = vld [vmem:[%s2126_s1 + $0x2e0] sm:$0xff]  ;;  %v110_v29 = vld [vmem:[%s2126_s1 + $0x2f8] sm:$0xff]  ;;  %v167_v30 = vrot.slane %v1572_v25, %v166_v16  ;;  %v1135_v34 = vpack.c.bf16 %v60_v27, %v57_v20  ;;  %v1622_v51 = vrot.slane %v1572_v25, %v162_v43 }
  0x16   :  { %1126 = vmatprep.subr.bf16.mxu0 %v1125_v63  ;;  %v64_v31 = vld [vmem:[%s2126_s1 + $0x188] sm:$0xff]  ;;  %v67_v32 = vld [vmem:[%s2126_s1 + $0x1a0] sm:$0xff]  ;;  %v1227_v33 = vpack.c.bf16 %v56_v24, %v53_v23  ;;  %v1229_v35 = vpack.c.bf16 %v110_v29, %v107_v28  ;;  %v62_v37 = vld [vmem:[%s2126_s1 + $0x178] sm:$0xff] }
  0x17   :  { %381 = vmatprep.mubr.f32.mxu1 %v167_v30  ;;  %v59_v36 = vld [vmem:[%s2126_s1 + $0x160] sm:$0xff]  ;;  %v1137_v38 = vpack.c.bf16 %v67_v32, %v64_v31  ;;  %v66_v40 = vld [vmem:[%s2126_s1 + $0x198] sm:$0xff]  ;;  %239 = vmatprep.mubr.f32.mxu0 %v167_v30  ;;  %v73_v42 = vld [vmem:[%s2126_s1 + $0x1d0] sm:$0xff] }
  0x18   :  { %1220 = vmatpush3.bf16.msra.mxu1 %v1219_v6  ;;  %v63_v39 = vld [vmem:[%s2126_s1 + $0x180] sm:$0xff]  ;;  %v70_v41 = vld [vmem:[%s2126_s1 + $0x1b8] sm:$0xff]  ;;  %v1231_v44 = vpack.c.bf16 %v62_v37, %v59_v36  ;;  %v113_v46 = vld [vmem:[%s2126_s1 + $0x310] sm:$0xff] }
  0x19   :  { %1128 = vmatpush1.bf16.msra.mxu0 %v1127_v7  ;;  %1222 = vmatprep.subr.bf16.mxu1 %v1221_v9  ;;  %v1139_v45 = vpack.c.bf16 %v66_v40, %v63_v39  ;;  %v116_v47 = vld [vmem:[%s2126_s1 + $0x328] sm:$0xff]  ;;  %v1141_v48 = vpack.c.bf16 %v73_v42, %v70_v41  ;;  %v69_v49 = vld [vmem:[%s2126_s1 + $0x1b0] sm:$0xff]  ;;  %v79_v53 = vld [vmem:[%s2126_s1 + $0x200] sm:$0xff] }
  0x1a   :  { %1130 = vmatprep.subr.bf16.mxu0 %v1129_v12  ;;  %v72_v50 = vld [vmem:[%s2126_s1 + $0x1c8] sm:$0xff]  ;;  %v1234_v54 = vpack.c.bf16 %v116_v47, %v113_v46  ;;  %v119_v57 = vld [vmem:[%s2126_s1 + $0x340] sm:$0xff]  ;;  %v122_v58 = vld [vmem:[%s2126_s1 + $0x358] sm:$0xff] }
  0x1b   :  { %v76_v52 = vld [vmem:[%s2126_s1 + $0x1e8] sm:$0xff]  ;;  %v1143_v55 = vpack.c.bf16 %v72_v50, %v69_v49  ;;  %v75_v60 = vld [vmem:[%s2126_s1 + $0x1e0] sm:$0xff]  ;;  %v78_v61 = vld [vmem:[%s2126_s1 + $0x1f8] sm:$0xff]  ;;  %v1237_v0 = vpack.c.bf16 %v122_v58, %v119_v57  ;;  %v170_v57 = vsub.s32 2, %v1527_v3 }
  0x1c   :  { %1224 = vmatpush3.bf16.msra.mxu1 %v1223_v19  ;;  %v1145_v59 = vpack.c.bf16 %v79_v53, %v76_v52  ;;  %v82_v62 = vld [vmem:[%s2126_s1 + $0x218] sm:$0xff]  ;;  %v85_v63 = vld [vmem:[%s2126_s1 + $0x230] sm:$0xff]  ;;  %v1147_v2 = vpack.c.bf16 %v78_v61, %v75_v60  ;;  %v128_v5 = vld [vmem:[%s2126_s1 + $0x388] sm:$0xff] }
  0x1d   :  { %1132 = vmatpush1.bf16.msra.mxu0 %v1131_v21  ;;  %1226 = vmatprep.subr.bf16.mxu1 %v1225_v22  ;;  %v125_v4 = vld [vmem:[%s2126_s1 + $0x370] sm:$0xff]  ;;  %v1149_v6 = vpack.c.bf16 %v85_v63, %v82_v62  ;;  %v84_v8 = vld [vmem:[%s2126_s1 + $0x228] sm:$0xff]  ;;  %v91_v10 = vld [vmem:[%s2126_s1 + $0x260] sm:$0xff] }
  0x1e   :  { %1134 = vmatprep.subr.bf16.mxu0 %v1133_v26  ;;  %v81_v7 = vld [vmem:[%s2126_s1 + $0x210] sm:$0xff]  ;;  %v88_v9 = vld [vmem:[%s2126_s1 + $0x248] sm:$0xff]  ;;  %v1240_v11 = vpack.c.bf16 %v128_v5, %v125_v4  ;;  %v131_v13 = vld [vmem:[%s2126_s1 + $0x3a0] sm:$0xff] }
  0x1f   :  { %v1151_v12 = vpack.c.bf16 %v84_v8, %v81_v7  ;;  %v134_v14 = vld [vmem:[%s2126_s1 + $0x3b8] sm:$0xff]  ;;  %v1153_v15 = vpack.c.bf16 %v91_v10, %v88_v9  ;;  %v87_v16 = vld [vmem:[%s2126_s1 + $0x240] sm:$0xff]  ;;  %v97_v19 = vld [vmem:[%s2126_s1 + $0x290] sm:$0xff] }
  0x20   :  { %1228 = vmatpush3.bf16.msra.mxu1 %v1227_v33  ;;  %v90_v17 = vld [vmem:[%s2126_s1 + $0x258] sm:$0xff]  ;;  %v1243_v20 = vpack.c.bf16 %v134_v14, %v131_v13  ;;  %v137_v22 = vld [vmem:[%s2126_s1 + $0x3d0] sm:$0xff]  ;;  %v140_v23 = vld [vmem:[%s2126_s1 + $0x3e8] sm:$0xff] }
  0x21   :  { %1136 = vmatpush1.bf16.msra.mxu0 %v1135_v34  ;;  %1230 = vmatprep.subr.bf16.mxu1 %v1229_v35  ;;  %v94_v18 = vld [vmem:[%s2126_s1 + $0x278] sm:$0xff]  ;;  %v1155_v21 = vpack.c.bf16 %v90_v17, %v87_v16  ;;  %v93_v26 = vld [vmem:[%s2126_s1 + $0x270] sm:$0xff]  ;;  %v96_v27 = vld [vmem:[%s2126_s1 + $0x288] sm:$0xff]  ;;  %v1246_v30 = vpack.c.bf16 %v140_v23, %v137_v22 }
  0x22   :  { %1138 = vmatprep.subr.bf16.mxu0 %v1137_v38  ;;  %v1157_v24 = vpack.c.bf16 %v97_v19, %v94_v18  ;;  %v100_v28 = vld [vmem:[%s2126_s1 + $0x2a8] sm:$0xff]  ;;  %v103_v29 = vld [vmem:[%s2126_s1 + $0x2c0] sm:$0xff]  ;;  %v1159_v31 = vpack.c.bf16 %v96_v27, %v93_v26  ;;  %v146_v33 = vld [vmem:[%s2126_s1 + $0x418] sm:$0xff] }
  0x23   :  { %v143_v32 = vld [vmem:[%s2126_s1 + $0x400] sm:$0xff]  ;;  %v1161_v34 = vpack.c.bf16 %v103_v29, %v100_v28  ;;  %v102_v36 = vld [vmem:[%s2126_s1 + $0x2b8] sm:$0xff]  ;;  %v109_v38 = vld [vmem:[%s2126_s1 + $0x2f0] sm:$0xff] }
  0x24   :  { %1232 = vmatpush3.bf16.msra.mxu1 %v1231_v44  ;;  %v99_v35 = vld [vmem:[%s2126_s1 + $0x2a0] sm:$0xff]  ;;  %v106_v37 = vld [vmem:[%s2126_s1 + $0x2d8] sm:$0xff]  ;;  %v1249_v39 = vpack.c.bf16 %v146_v33, %v143_v32  ;;  %v149_v41 = vld [vmem:[%s2126_s1 + $0x430] sm:$0xff] }
  0x25   :  { %1140 = vmatpush1.bf16.msra.mxu0 %v1139_v45  ;;  %1233 = vmatprep.subr.bf16.mxu1 %v1366_v56  ;;  %v1163_v40 = vpack.c.bf16 %v102_v36, %v99_v35  ;;  %v152_v42 = vld [vmem:[%s2126_s1 + $0x448] sm:$0xff]  ;;  %v1165_v43 = vpack.c.bf16 %v109_v38, %v106_v37  ;;  %v105_v44 = vld [vmem:[%s2126_s1 + $0x2d0] sm:$0xff]  ;;  %v115_v47 = vld [vmem:[%s2126_s1 + $0x320] sm:$0xff] }
  0x26   :  { %1142 = vmatprep.subr.bf16.mxu0 %v1141_v48  ;;  %v108_v45 = vld [vmem:[%s2126_s1 + $0x2e8] sm:$0xff]  ;;  %v1252_v48 = vpack.c.bf16 %v152_v42, %v149_v41  ;;  %v155_v50 = vld [vmem:[%s2126_s1 + $0x460] sm:$0xff]  ;;  %v158_v52 = vld [vmem:[%s2126_s1 + $0x478] sm:$0xff] }
  0x27   :  { %382 = vmatmul.mubr.f32.vlgmr.msra.gmra.mrb[0].mxu1 %v1622_v51  ;;  %v112_v46 = vld [vmem:[%s2126_s1 + $0x308] sm:$0xff]  ;;  %v1167_v49 = vpack.c.bf16 %v108_v45, %v105_v44  ;;  %v118_v58 = vld [vmem:[%s2126_s1 + $0x338] sm:$0xff]  ;;  %v1255_v60 = vpack.c.bf16 %v158_v52, %v155_v50  ;;  %v117_v3 = vld [vmem:[%s2126_s1 + $0x330] sm:$0xff] }
  0x28   :  { %1235 = vmatpush3.bf16.msra.mxu1 %v1234_v54  ;;  %997 = vmatprep.mubr.msk.f32.mxu1 %vm1367_vm0, %v1368_v1  ;;  %v1169_v53 = vpack.c.bf16 %v115_v47, %v112_v46  ;;  %v111_v54 = vld [vmem:[%s2126_s1 + $0x300] sm:$0xff]  ;;  %v120_v63 = vld [vmem:[%s2126_s1 + $0x348] sm:$0xff]  ;;  %v126_v7 = vld [vmem:[%s2126_s1 + $0x378] sm:$0xff] }
  0x29   :  { %1144 = vmatpush1.bf16.msra.mxu0 %v1143_v55  ;;  %1236 = vmatprep.subr.bf16.mxu1 %v1366_v56  ;;  %v114_v55 = vld [vmem:[%s2126_s1 + $0x318] sm:$0xff]  ;;  %v127_v4 = vld [vmem:[%s2126_s1 + $0x380] sm:$0xff]  ;;  %v1175_v5 = vpack.c.bf16 %v120_v63, %v117_v3  ;;  %v133_v8 = vld [vmem:[%s2126_s1 + $0x3b0] sm:$0xff] }
  0x2a   :  { %1146 = vmatprep.subr.bf16.mxu0 %v1145_v59  ;;  %v121_v59 = vld [vmem:[%s2126_s1 + $0x350] sm:$0xff]  ;;  %v1171_v61 = vpack.c.bf16 %v114_v55, %v111_v54  ;;  %v136_v13 = vld [vmem:[%s2126_s1 + $0x3c8] sm:$0xff]  ;;  %v139_v14 = vld [vmem:[%s2126_s1 + $0x3e0] sm:$0xff] }
  0x2b   :  { %v1173_v62 = vpack.c.bf16 %v121_v59, %v118_v58  ;;  %v1185_v16 = vpack.c.bf16 %v139_v14, %v136_v13  ;;  %v135_v17 = vld [vmem:[%s2126_s1 + $0x3c0] sm:$0xff]  ;;  %v138_v18 = vld [vmem:[%s2126_s1 + $0x3d8] sm:$0xff]  ;;  %v141_v23 = vld [vmem:[%s2126_s1 + $0x3f0] sm:$0xff] }
  0x2c   :  { %1238 = vmatpush3.bf16.msra.mxu1 %v1237_v0  ;;  %v1775_v0 = vrot.slane %v1572_v25, %v170_v57  ;;  %v123_v25 = vld [vmem:[%s2126_s1 + $0x360] sm:$0xff]  ;;  %v142_v19 = vld [vmem:[%s2126_s1 + $0x3f8] sm:$0xff]  ;;  %v148_v26 = vld [vmem:[%s2126_s1 + $0x428] sm:$0xff] }
  0x2d   :  { %1148 = vmatpush1.bf16.msra.mxu0 %v1147_v2  ;;  %1239 = vmatprep.subr.bf16.mxu1 %v1366_v56  ;;  %v124_v2 = vld [vmem:[%s2126_s1 + $0x368] sm:$0xff]  ;;  %v1179_v9 = vpack.c.bf16 %v126_v7, %v123_v25  ;;  %v151_v27 = vld [vmem:[%s2126_s1 + $0x440] sm:$0xff]  ;;  %v154_v32 = vld [vmem:[%s2126_s1 + $0x458] sm:$0xff] }
  0x2e   :  { %1150 = vmatprep.subr.bf16.mxu0 %v1149_v6  ;;  %v1177_v6 = vpack.c.bf16 %v127_v4, %v124_v2  ;;  %v1193_v29 = vpack.c.bf16 %v151_v27, %v148_v26  ;;  %v157_v33 = vld [vmem:[%s2126_s1 + $0x470] sm:$0xff]  ;;  %v156_v37 = vld [vmem:[%s2126_s1 + $0x468] sm:$0xff]  ;;  %v496_v45 = vld [vmem:[%s2128_s2 + $0x120] sm:$0xff] }
  0x2f   :  { %v1197_v35 = vpack.c.bf16 %v157_v33, %v154_v32  ;;  %v153_v36 = vld [vmem:[%s2126_s1 + $0x450] sm:$0xff]  ;;  %v497_v46 = vld [vmem:[%s2128_s2 + $0x128] sm:$0xff]  ;;  %v500_v52 = vld [vmem:[%s2128_s2 + $0x140] sm:$0xff] }
  0x30   :  { %1241 = vmatpush3.bf16.msra.mxu1 %v1240_v11  ;;  %v129_v11 = vld [vmem:[%s2126_s1 + $0x390] sm:$0xff]  ;;  %v1199_v38 = vpack.c.bf16 %v156_v37, %v153_v36  ;;  %v1296_v47 = vpack.c.bf16 %v497_v46, %v496_v45  ;;  %v503_v57 = vld [vmem:[%s2128_s2 + $0x158] sm:$0xff]  ;;  %v504_v59 = vld [vmem:[%s2128_s2 + $0x160] sm:$0xff] }
  0x31   :  { %1152 = vmatpush1.bf16.msra.mxu0 %v1151_v12  ;;  %1242 = vmatprep.subr.bf16.mxu1 %v1366_v56  ;;  %v132_v12 = vld [vmem:[%s2126_s1 + $0x3a8] sm:$0xff]  ;;  %v494_v42 = vld [vmem:[%s2128_s2 + $0x110] sm:$0xff]  ;;  %v464_v14 = vld [vmem:[%s2128_s2 + $0x20] sm:$0xff] }
  0x32   :  { %1154 = vmatprep.subr.bf16.mxu0 %v1153_v15  ;;  %v1183_v15 = vpack.c.bf16 %v132_v12, %v129_v11  ;;  %v502_v55 = vld [vmem:[%s2128_s2 + $0x150] sm:$0xff]  ;;  %v477_v3 = vld [vmem:[%s2128_s2 + $0x88] sm:$0xff]  ;;  %v480_v12 = vld [vmem:[%s2128_s2 + $0xa0] sm:$0xff] }
  0x33   :  { %v1305_v58 = vpack.c.bf16 %v503_v57, %v502_v55  ;;  %v461_v2 = vld [vmem:[%s2128_s2 + $0x8] sm:$0xff]  ;;  %v478_v7 = vld [vmem:[%s2128_s2 + $0x90] sm:$0xff]  ;;  %v488_v36 = vld [vmem:[%s2128_s2 + $0xe0] sm:$0xff] }
  0x34   :  { %1244 = vmatpush3.bf16.msra.mxu1 %v1243_v20  ;;  %v145_v20 = vld [vmem:[%s2126_s1 + $0x410] sm:$0xff]  ;;  %v481_v13 = vld [vmem:[%s2128_s2 + $0xa8] sm:$0xff] }
  0x35   :  { %1156 = vmatpush1.bf16.msra.mxu0 %v1155_v21  ;;  %1245 = vmatprep.subr.bf16.mxu1 %v1366_v56  ;;  %v1187_v21 = vpack.c.bf16 %v138_v18, %v135_v17  ;;  %v1189_v22 = vpack.c.bf16 %v145_v20, %v142_v19  ;;  %v482_v17 = vld [vmem:[%s2128_s2 + $0xb0] sm:$0xff]  ;;  %v483_v18 = vld [vmem:[%s2128_s2 + $0xb8] sm:$0xff]  ;;  %v489_v37 = vld [vmem:[%s2128_s2 + $0xe8] sm:$0xff] }
  0x36   :  { %1158 = vmatprep.subr.bf16.mxu0 %v1157_v24  ;;  %v144_v24 = vld [vmem:[%s2126_s1 + $0x408] sm:$0xff]  ;;  %v1269_v20 = vpack.c.bf16 %v483_v18, %v482_v17  ;;  %v474_v46 = vld [vmem:[%s2128_s2 + $0x70] sm:$0xff]  ;;  %v664_v18 = vld [vmem:[%s2128_s2 + $0x1f8] sm:$0xff] }
  0x37   :  { %v1191_v28 = vpack.c.bf16 %v144_v24, %v141_v23  ;;  %v484_v23 = vld [vmem:[%s2128_s2 + $0xc0] sm:$0xff]  ;;  %v485_v24 = vld [vmem:[%s2128_s2 + $0xc8] sm:$0xff]  ;;  %v663_v17 = vld [vmem:[%s2128_s2 + $0x1f0] sm:$0xff] }
  0x38   :  { %1247 = vmatpush3.bf16.msra.mxu1 %v1246_v30  ;;  %v147_v30 = vld [vmem:[%s2126_s1 + $0x420] sm:$0xff]  ;;  %v1273_v27 = vpack.c.bf16 %v485_v24, %v484_v23  ;;  %v739_v24 = vld [vmem:[%s2128_s2 + $0x218] sm:$0xff] }
  0x39   :  { %1160 = vmatpush1.bf16.msra.mxu0 %v1159_v31  ;;  %1248 = vmatprep.subr.bf16.mxu1 %v1366_v56  ;;  %v150_v31 = vld [vmem:[%s2126_s1 + $0x438] sm:$0xff] }
  0x3a   :  { %1162 = vmatprep.subr.bf16.mxu0 %v1161_v34  ;;  %v1195_v34 = vpack.c.bf16 %v150_v31, %v147_v30  ;;  %v486_v30 = vld [vmem:[%s2128_s2 + $0xd0] sm:$0xff]  ;;  %v487_v31 = vld [vmem:[%s2128_s2 + $0xd8] sm:$0xff] }
  0x3b   :  { %v1277_v33 = vpack.c.bf16 %v487_v31, %v486_v30  ;;  %v742_v30 = vld [vmem:[%s2128_s2 + $0x230] sm:$0xff]  ;;  %v743_v31 = vld [vmem:[%s2128_s2 + $0x238] sm:$0xff] }
  0x3c   :  { %1250 = vmatpush3.bf16.msra.mxu1 %v1249_v39  ;;  %v492_v39 = vld [vmem:[%s2128_s2 + $0x100] sm:$0xff] }
  0x3d   :  { %1164 = vmatpush1.bf16.msra.mxu0 %v1163_v40  ;;  %1251 = vmatprep.subr.bf16.mxu1 %v1366_v56  ;;  %v493_v40 = vld [vmem:[%s2128_s2 + $0x108] sm:$0xff] }
  0x3e   :  { %1166 = vmatprep.subr.bf16.mxu0 %v1165_v43  ;;  %v1290_v41 = vpack.c.bf16 %v493_v40, %v492_v39  ;;  %v495_v43 = vld [vmem:[%s2128_s2 + $0x118] sm:$0xff]  ;;  %v1281_v39 = vpack.c.bf16 %v489_v37, %v488_v36  ;;  %v472_v40 = vld [vmem:[%s2128_s2 + $0x60] sm:$0xff]  ;;  %v746_v36 = vld [vmem:[%s2128_s2 + $0x250] sm:$0xff] }
  0x3f   :  { %v1293_v44 = vpack.c.bf16 %v495_v43, %v494_v42  ;;  %v490_v43 = vld [vmem:[%s2128_s2 + $0xf0] sm:$0xff]  ;;  %v747_v37 = vld [vmem:[%s2128_s2 + $0x258] sm:$0xff] }
  0x40   :  { %1253 = vmatpush3.bf16.msra.mxu1 %v1252_v48  ;;  %v498_v48 = vld [vmem:[%s2128_s2 + $0x130] sm:$0xff] }
  0x41   :  { %1168 = vmatpush1.bf16.msra.mxu0 %v1167_v49  ;;  %1254 = vmatprep.subr.bf16.mxu1 %v1366_v56  ;;  %v499_v49 = vld [vmem:[%s2128_s2 + $0x138] sm:$0xff] }
  0x42   :  { %1170 = vmatprep.subr.bf16.mxu0 %v1169_v53  ;;  %v1299_v50 = vpack.c.bf16 %v499_v49, %v498_v48  ;;  %v501_v53 = vld [vmem:[%s2128_s2 + $0x148] sm:$0xff] }
  0x43   :  { %v1302_v54 = vpack.c.bf16 %v501_v53, %v500_v52 }
  0x44   :  { %240 = vmatmul.mubr.f32.vlgmr.msra.gmra.mrb[0].mxu0 %v1622_v51  ;;  %1256 = vmatpush3.bf16.msra.mxu1 %v1255_v60  ;;  %v130_v51 = vld [vmem:[%s2126_s1 + $0x398] sm:$0xff]  ;;  %v505_v60 = vld [vmem:[%s2128_s2 + $0x168] sm:$0xff] }
  0x45   :  { %1172 = vmatpush1.bf16.msra.mxu0 %v1171_v61  ;;  %310 = vmatprep.mubr.f32.mxu0 %v1368_v1  ;;  %v1181_v10 = vpack.c.bf16 %v133_v8, %v130_v51  ;;  %v1308_v61 = vpack.c.bf16 %v505_v60, %v504_v59  ;;  %v479_v51 = vld [vmem:[%s2128_s2 + $0x98] sm:$0xff]  ;;  %v462_v8 = vld [vmem:[%s2128_s2 + $0x10] sm:$0xff] }
  0x46   :  { %1174 = vmatprep.subr.bf16.mxu0 %v1173_v62  ;;  %v476_v62 = vld [vmem:[%s2128_s2 + $0x80] sm:$0xff] }
  0x47   :  { %998 = vmatmul.mubr.f32.vlgmr.msra.gmra.mrb[2].mxu1 %v1775_v0  ;;  %v1257_v63 = vpack.c.bf16 %v477_v3, %v476_v62  ;;  %v649_v62 = vld [vmem:[%s2128_s2 + $0x180] sm:$0xff]  ;;  %v650_v3 = vld [vmem:[%s2128_s2 + $0x188] sm:$0xff] }
  0x49   :  { %1176 = vmatpush1.bf16.msra.mxu0 %v1175_v5  ;;  %v506_v5 = vld [vmem:[%s2128_s2 + $0x170] sm:$0xff]  ;;  %1258 = vmatprep.subr.bf16.mxu1 %v1257_v63 }
  0x4a   :  { %1178 = vmatprep.subr.bf16.mxu0 %v1177_v6  ;;  %v507_v6 = vld [vmem:[%s2128_s2 + $0x178] sm:$0xff]  ;;  %v651_v63 = vld [vmem:[%s2128_s2 + $0x190] sm:$0xff] }
  0x4b   :  { %v1311_v25 = vpack.c.bf16 %v507_v6, %v506_v5  ;;  %v654_v5 = vld [vmem:[%s2128_s2 + $0x1a8] sm:$0xff] }
  0x4d   :  { %1180 = vmatpush1.bf16.msra.mxu0 %v1179_v9  ;;  %v1261_v9 = vpack.c.bf16 %v479_v51, %v478_v7  ;;  %v656_v7 = vld [vmem:[%s2128_s2 + $0x1b8] sm:$0xff] }
  0x4e   :  { %1182 = vmatprep.subr.bf16.mxu0 %v1181_v10  ;;  %v463_v10 = vld [vmem:[%s2128_s2 + $0x18] sm:$0xff] }
  0x4f   :  { %v1263_v11 = vpack.c.bf16 %v463_v10, %v462_v8  ;;  %v657_v8 = vld [vmem:[%s2128_s2 + $0x1c0] sm:$0xff] }
  0x51   :  { %1184 = vmatpush1.bf16.msra.mxu0 %v1183_v15  ;;  %v1265_v15 = vpack.c.bf16 %v481_v13, %v480_v12  ;;  %v660_v12 = vld [vmem:[%s2128_s2 + $0x1d8] sm:$0xff] }
  0x52   :  { %1186 = vmatprep.subr.bf16.mxu0 %v1185_v16  ;;  %v465_v16 = vld [vmem:[%s2128_s2 + $0x28] sm:$0xff] }
  0x53   :  { %v1267_v19 = vpack.c.bf16 %v465_v16, %v464_v14  ;;  %v661_v14 = vld [vmem:[%s2128_s2 + $0x1e0] sm:$0xff] }
  0x55   :  { %1188 = vmatpush1.bf16.msra.mxu0 %v1187_v21  ;;  %v466_v21 = vld [vmem:[%s2128_s2 + $0x30] sm:$0xff] }
  0x56   :  { %1190 = vmatprep.subr.bf16.mxu0 %v1189_v22  ;;  %v467_v22 = vld [vmem:[%s2128_s2 + $0x38] sm:$0xff] }
  0x57   :  { %v1271_v26 = vpack.c.bf16 %v467_v22, %v466_v21  ;;  %v737_v21 = vld [vmem:[%s2128_s2 + $0x208] sm:$0xff]  ;;  %v738_v22 = vld [vmem:[%s2128_s2 + $0x210] sm:$0xff] }
  0x59   :  { %1192 = vmatpush1.bf16.msra.mxu0 %v1191_v28  ;;  %v468_v28 = vld [vmem:[%s2128_s2 + $0x40] sm:$0xff] }
  0x5a   :  { %1194 = vmatprep.subr.bf16.mxu0 %v1193_v29  ;;  %v469_v29 = vld [vmem:[%s2128_s2 + $0x48] sm:$0xff] }
  0x5b   :  { %v1275_v32 = vpack.c.bf16 %v469_v29, %v468_v28  ;;  %v741_v28 = vld [vmem:[%s2128_s2 + $0x228] sm:$0xff] }
  0x5d   :  { %1196 = vmatpush1.bf16.msra.mxu0 %v1195_v34  ;;  %v470_v34 = vld [vmem:[%s2128_s2 + $0x50] sm:$0xff] }
  0x5e   :  { %1198 = vmatprep.subr.bf16.mxu0 %v1197_v35  ;;  %v471_v35 = vld [vmem:[%s2128_s2 + $0x58] sm:$0xff] }
  0x61   :  { %1200 = vmatpush1.bf16.msra.mxu0 %v1199_v38  ;;  %v1279_v38 = vpack.c.bf16 %v471_v35, %v470_v34  ;;  %v745_v34 = vld [vmem:[%s2128_s2 + $0x248] sm:$0xff] }
  0x62   :  { %1289 = vmatprep.subr.bf16.mxu0 %v1366_v56 }
  0x64   :  { %311 = vmatmul.mubr.f32.vlgmr.msra.gmra.mrb[0].mxu0 %v1775_v0  ;;  %v460_v0 = vld [vmem:[%s2128_s2] sm:$0xff] }
  0x65   :  { %1291 = vmatpush3.bf16.msra.mxu0 %v1290_v41  ;;  %1032 = vmatprep.mubr.msk.f32.mxu0 %vm1367_vm0, %v1368_v1  ;;  %v1259_v4 = vpack.c.bf16 %v461_v2, %v460_v0  ;;  %v473_v41 = vld [vmem:[%s2128_s2 + $0x68] sm:$0xff]  ;;  %v1314_v0 = vpack.c.bf16 %v650_v3, %v649_v62  ;;  %v652_v2 = vld [vmem:[%s2128_s2 + $0x198] sm:$0xff] }
  0x66   :  { %1292 = vmatprep.subr.bf16.mxu0 %v1366_v56  ;;  %v1283_v42 = vpack.c.bf16 %v473_v41, %v472_v40  ;;  %v749_v40 = vld [vmem:[%s2128_s2 + $0x268] sm:$0xff] }
  0x67   :  { %1260 = vmatpush3.bf16.msra.mxu1 %v1259_v4  ;;  %v1317_v4 = vpack.c.bf16 %v652_v2, %v651_v63 }
  0x68   :  { %1262 = vmatprep.subr.bf16.mxu1 %v1261_v9  ;;  %v658_v9 = vld [vmem:[%s2128_s2 + $0x1c8] sm:$0xff] }
  0x69   :  { %1294 = vmatpush3.bf16.msra.mxu0 %v1293_v44  ;;  %v491_v44 = vld [vmem:[%s2128_s2 + $0xf8] sm:$0xff]  ;;  %v1326_v10 = vpack.c.bf16 %v658_v9, %v657_v8 }
  0x6a   :  { %1295 = vmatprep.subr.bf16.mxu0 %v1366_v56  ;;  %v1285_v45 = vpack.c.bf16 %v491_v44, %v490_v43 }
  0x6b   :  { %1264 = vmatpush3.bf16.msra.mxu1 %v1263_v11  ;;  %v659_v11 = vld [vmem:[%s2128_s2 + $0x1d0] sm:$0xff] }
  0x6c   :  { %1266 = vmatprep.subr.bf16.mxu1 %v1265_v15  ;;  %v1329_v13 = vpack.c.bf16 %v660_v12, %v659_v11  ;;  %v662_v15 = vld [vmem:[%s2128_s2 + $0x1e8] sm:$0xff] }
  0x6d   :  { %1297 = vmatpush3.bf16.msra.mxu0 %v1296_v47  ;;  %v475_v47 = vld [vmem:[%s2128_s2 + $0x78] sm:$0xff]  ;;  %v1332_v16 = vpack.c.bf16 %v662_v15, %v661_v14 }
  0x6e   :  { %1298 = vmatprep.subr.bf16.mxu0 %v1366_v56  ;;  %v1287_v48 = vpack.c.bf16 %v475_v47, %v474_v46 }
  0x6f   :  { %1268 = vmatpush3.bf16.msra.mxu1 %v1267_v19  ;;  %v1335_v19 = vpack.c.bf16 %v664_v18, %v663_v17 }
  0x70   :  { %1270 = vmatprep.subr.bf16.mxu1 %v1269_v20  ;;  %v736_v20 = vld [vmem:[%s2128_s2 + $0x200] sm:$0xff] }
  0x71   :  { %1300 = vmatpush3.bf16.msra.mxu0 %v1299_v50  ;;  %v1338_v23 = vpack.c.bf16 %v737_v21, %v736_v20 }
  0x72   :  { %1301 = vmatprep.subr.bf16.mxu0 %v1366_v56 }
  0x73   :  { %1272 = vmatpush3.bf16.msra.mxu1 %v1271_v26  ;;  %v1341_v26 = vpack.c.bf16 %v739_v24, %v738_v22 }
  0x74   :  { %1274 = vmatprep.subr.bf16.mxu1 %v1273_v27  ;;  %v740_v27 = vld [vmem:[%s2128_s2 + $0x220] sm:$0xff] }
  0x75   :  { %1303 = vmatpush3.bf16.msra.mxu0 %v1302_v54  ;;  %v1344_v29 = vpack.c.bf16 %v741_v28, %v740_v27 }
  0x76   :  { %1304 = vmatprep.subr.bf16.mxu0 %v1366_v56 }
  0x77   :  { %1276 = vmatpush3.bf16.msra.mxu1 %v1275_v32  ;;  %v1347_v32 = vpack.c.bf16 %v743_v31, %v742_v30 }
  0x78   :  { %1278 = vmatprep.subr.bf16.mxu1 %v1277_v33  ;;  %v744_v33 = vld [vmem:[%s2128_s2 + $0x240] sm:$0xff] }
  0x79   :  { %1306 = vmatpush3.bf16.msra.mxu0 %v1305_v58  ;;  %v1350_v35 = vpack.c.bf16 %v745_v34, %v744_v33 }
  0x7a   :  { %1307 = vmatprep.subr.bf16.mxu0 %v1366_v56 }
  0x7b   :  { %1280 = vmatpush3.bf16.msra.mxu1 %v1279_v38  ;;  %v1353_v38 = vpack.c.bf16 %v747_v37, %v746_v36 }
  0x7c   :  { %1282 = vmatprep.subr.bf16.mxu1 %v1281_v39  ;;  %v748_v39 = vld [vmem:[%s2128_s2 + $0x260] sm:$0xff] }
  0x7d   :  { %1309 = vmatpush3.bf16.msra.mxu0 %v1308_v61  ;;  %v1356_v41 = vpack.c.bf16 %v749_v40, %v748_v39 }
  0x7e   :  { %1310 = vmatprep.subr.bf16.mxu0 %v1366_v56 }
  0x7f   :  { %1284 = vmatpush3.bf16.msra.mxu1 %v1283_v42 }
  0x80   :  { %1286 = vmatprep.subr.bf16.mxu1 %v1285_v45 }
  0x81   :  { %1312 = vmatpush3.bf16.msra.mxu0 %v1311_v25  ;;  %v655_v25 = vld [vmem:[%s2128_s2 + $0x1b0] sm:$0xff] }
  0x82   :  { %1337 = vmatprep.subr.bf16.mxu0 %v1366_v56  ;;  %v1323_v51 = vpack.c.bf16 %v656_v7, %v655_v25 }
  0x83   :  { %1288 = vmatpush3.bf16.msra.mxu1 %v1287_v48 }
  0x84   :  { %1313 = vmatprep.subr.bf16.mxu1 %v1366_v56 }
  0xfa   :  { %v859_v49 = vpop.f32.mrb[0].mxu1 }
  0xfb   :  { %v860_v50 = vpop.f32.mrb[1].mxu1 }
  0xfc   :  { %v861_v52 = vadd.f32 %v860_v50, %v859_v49  ;;  %v750_v49 = vld [vmem:[%s2128_s2 + $0x270] sm:$0xff]  ;;  %v751_v50 = vld [vmem:[%s2128_s2 + $0x278] sm:$0xff] }
 0x11a   :  { %v453_v53 = vpop.f32.mrb[2].mxu1 }
 0x11b   :  { %v454_v54 = vadd.f32 %v861_v52, %v453_v53  ;;  %v999_v55 = vpop.f32.mrb[3].mxu1  ;;  %v1359_v52 = vpack.c.bf16 %v751_v50, %v750_v49 }
 0x11d   :  { %v459_v57 = vmax.f32 %v454_v54, 0.0 }
 0x11f   :  { %1033 = vmatmul.mubr.f32.vlgmr.msra.gmra.mrb[2].mxu0 %v459_v57 }
 0x120   :  { %1102 = vmatprep.mubr.msk.f32.mxu0 %vm1367_vm0, %v1368_v1  ;;  %1339 = vmatpush3.bf16.msra.mxu0 %v1338_v23 }
 0x121   :  { %1340 = vmatprep.subr.bf16.mxu0 %v1366_v56 }
 0x124   :  { %1342 = vmatpush3.bf16.msra.mxu0 %v1341_v26 }
 0x125   :  { %1343 = vmatprep.subr.bf16.mxu0 %v1366_v56 }
 0x128   :  { %1345 = vmatpush3.bf16.msra.mxu0 %v1344_v29 }
 0x129   :  { %1346 = vmatprep.subr.bf16.mxu0 %v1366_v56 }
 0x12c   :  { %1348 = vmatpush3.bf16.msra.mxu0 %v1347_v32 }
 0x12d   :  { %1349 = vmatprep.subr.bf16.mxu0 %v1366_v56 }
 0x130   :  { %1351 = vmatpush3.bf16.msra.mxu0 %v1350_v35 }
 0x131   :  { %1352 = vmatprep.subr.bf16.mxu0 %v1366_v56 }
 0x134   :  { %1354 = vmatpush3.bf16.msra.mxu0 %v1353_v38 }
 0x135   :  { %1355 = vmatprep.subr.bf16.mxu0 %v1366_v56 }
 0x137   :  { %v312_v58 = vpop.f32.mrb[0].mxu0 }
 0x138   :  { %v314_v59 = vpop.f32.mrb[1].mxu0  ;;  %v457_v61 = vmax.f32 %v312_v58, 0.0  ;;  %1357 = vmatpush3.bf16.msra.mxu0 %v1356_v41 }
 0x139   :  { %v458_v60 = vmax.f32 %v314_v59, 0.0  ;;  %1358 = vmatprep.subr.bf16.mxu0 %v1366_v56 }
 0x13b   :  { %572 = vmatprep.mubr.f32.mxu1 %v458_v60 }
 0x13c   :  { %573 = vmatmul.mubr.f32.vlgmr.msra.gmra.mrb[4].mxu1 %v457_v61  ;;  %1360 = vmatpush3.bf16.msra.mxu0 %v1359_v52 }
 0x13d   :  { %1067 = vmatprep.mubr.msk.f32.mxu1 %vm1367_vm0, %v1368_v1  ;;  %1315 = vmatpush3.bf16.msra.mxu1 %v1314_v0  ;;  %v653_v1 = vld [vmem:[%s2128_s2 + $0x1a0] sm:$0xff] }
 0x13e   :  { %1316 = vmatprep.subr.bf16.mxu1 %v1366_v56  ;;  %v1320_v6 = vpack.c.bf16 %v654_v5, %v653_v1 }
 0x141   :  { %1318 = vmatpush3.bf16.msra.mxu1 %v1317_v4 }
 0x142   :  { %1319 = vmatprep.subr.bf16.mxu1 %v1366_v56 }
 0x145   :  { %1321 = vmatpush3.bf16.msra.mxu1 %v1320_v6 }
 0x146   :  { %1322 = vmatprep.subr.bf16.mxu1 %v1366_v56 }
 0x149   :  { %1324 = vmatpush3.bf16.msra.mxu1 %v1323_v51 }
 0x14a   :  { %1325 = vmatprep.subr.bf16.mxu1 %v1366_v56 }
 0x14d   :  { %1327 = vmatpush3.bf16.msra.mxu1 %v1326_v10 }
 0x14e   :  { %1328 = vmatprep.subr.bf16.mxu1 %v1366_v56 }
 0x151   :  { %1330 = vmatpush3.bf16.msra.mxu1 %v1329_v13 }
 0x152   :  { %1331 = vmatprep.subr.bf16.mxu1 %v1366_v56 }
 0x155   :  { %1333 = vmatpush3.bf16.msra.mxu1 %v1332_v16 }
 0x156   :  { %1334 = vmatprep.subr.bf16.mxu1 %v1366_v56 }
 0x159   :  { %1336 = vmatpush3.bf16.msra.mxu1 %v1335_v19 }
 0x1f2   :  { %v644_v42 = vpop.f32.mrb[2].mxu0 }
 0x1f3   :  { %v1034_v43 = vpop.f32.mrb[3].mxu0 }
 0x20f   :  { %v911_v44 = vpop.f32.mrb[4].mxu1 }
 0x210   :  { %v912_v45 = vpop.f32.mrb[5].mxu1 }
 0x211   :  { %v913_v46 = vadd.f32 %v912_v45, %v911_v44 }
 0x213   :  { %v645_v47 = vadd.f32 %v913_v46, %v644_v42 }
 0x215   :  { %v648_v48 = vmax.f32 %v645_v47, 0.0 }
 0x217   :  { %1068 = vmatmul.mubr.f32.vlgmr.msra.gmra.mrb[6].mxu1 %v648_v48 }
 0x2ea   :  { %v731_v53 = vpop.f32.mrb[6].mxu1 }
 0x2eb   :  { %v735_v56 = vmax.f32 %v731_v53, 0.0  ;;  %v1069_v54 = vpop.f32.mrb[7].mxu1 }
 0x2ed   :  { %1103 = vmatmul.mubr.f32.vlgmr.msra.gmra.mrb[4].mxu0 %v735_v56 }
 0x3c0   :  { %v818_v55 = vpop.f32.mrb[4].mxu0 }
 0x3c1   :  { %822 = vst [vmem:[%s2129_s3] sm:$0x1] %v818_v55  ;;  %v1104_v57 = vpop.f32.mrb[5].mxu0 }

</bundles_post_ra>
